<compile_context>
chip_gen: v5e
topology: v5e:2x2
jax: 0.10.0
libtpu: 0.0.40
codegen_flags: <defaults>
</compile_context>

<pallas_src>
from functools import partial

import jax
import jax.numpy as jnp
from jax.experimental import pallas as pl
from jax.experimental.pallas import tpu as pltpu

_LANES = 128


def _round_up(x, m):
    return ((x + m - 1) // m) * m


def _choose_row_tile(n_rows):
    """Rows (second-minor dim) per block of the packed [R, 128] input."""
    # ~4 MiB of f32 input per block amortises the ~0.35 us/step pipeline
    # overhead to <1% while the double-buffered working set (2 x (4 MiB in +
    # 0.5 MiB out)) stays well inside every generation's VMEM budget.
    target = 8192
    if n_rows <= 1024:
        # <= 512 KiB total: a single full-extent block (always a legal block
        # shape) -- splitting would be pure per-step overhead.
        return n_rows
    if n_rows <= 2 * target:
        # Split ~evenly into two blocks: keeps both TensorCores busy on v7x
        # via dimension_semantics=("parallel",); on single-TC v5e/v6e the
        # extra grid step costs <~5% at >= 512 KiB per block.
        return _round_up(pl.cdiv(n_rows, 2), 8)
    return target


def _actor_kernel(x_ref, w_ref, b_ref, o_ref):
    # x_ref: (TR, 128) f32 VMEM -- 128/F packed activation rows per lane-row
    # w_ref: (128, NO) f32 VMEM -- block-diagonal kron(I_NO, conv_w), DMA'd once
    # b_ref: (1, 1)    f32 SMEM -- conv bias scalar
    # o_ref: (TR, NO)  f32 VMEM -- ReLU(conv) results, row-major packed
    acc = jnp.dot(x_ref[...], w_ref[...],
                  preferred_element_type=jnp.float32,
                  precision=jax.lax.Precision.HIGHEST)
    o_ref[...] = jnp.maximum(acc + b_ref[0, 0], 0.0)


def _actor_forward_pallas(xm, weight, bias):
    """xm: [M, F] f32 (row-major, OW == 1 case, 128 % F == 0) -> [M] logits."""
    M, F_dim = xm.shape
    n_out = _LANES // F_dim                      # packed rows per 128-lane row

    flat = xm.reshape(-1)                        # free view
    total = flat.shape[0]
    padded = _round_up(total, _LANES)
    if padded != total:
        # Rare (M not a multiple of 128/F): one small pad copy so the packed
        # lane-dense view exists.  Canonical shapes never hit this.
        flat = jnp.pad(flat, (0, padded - total))
    xp = flat.reshape(padded // _LANES, _LANES)  # free, lane-dense packed view
    R = xp.shape[0]

    tile = _choose_row_tile(R)
    grid = (pl.cdiv(R, tile),)

    # Block-diagonal "multiply + segment-reduce + de-interleave" matrix:
    # wk[a*F + f, j] = (a == j) * w[f]  ->  out[r, j] = sum_f x[r*n_out+j, f]*w[f]
    w_col = weight.reshape(F_dim, 1).astype(jnp.float32)
    wk = jnp.kron(jnp.eye(n_out, dtype=jnp.float32), w_col)   # [128, n_out]
    b2 = bias.reshape(1, 1).astype(jnp.float32)

    cost = pl.CostEstimate(
        flops=2 * R * _LANES * n_out,
        transcendentals=0,
        bytes_accessed=4 * (R * _LANES + _LANES * n_out + R * n_out),
    )

    out = pl.pallas_call(
        _actor_kernel,
        out_shape=jax.ShapeDtypeStruct((R, n_out), jnp.float32),
        grid=grid,
        in_specs=[
            pl.BlockSpec((tile, _LANES), lambda i: (i, 0)),
            pl.BlockSpec((_LANES, n_out), lambda i: (0, 0)),
            pl.BlockSpec((1, 1), lambda i: (0, 0), memory_space=pltpu.SMEM),
        ],
        out_specs=pl.BlockSpec((tile, n_out), lambda i: (i, 0)),
        compiler_params=pltpu.CompilerParams(
            dimension_semantics=("parallel",),
            vmem_limit_bytes=32 * 1024 * 1024,
        ),
        cost_estimate=cost,
    )(xp, wk, b2)

    # Packed [R, n_out] flattens back to row order for free; drop the pad tail.
    return out.reshape(-1)[:M]


def _xla_forward(x, weight, bias):
    """Fused XLA path: tiny problems, OW > 1, or feature_dim not dividing 128."""
    # TODO(synk): dedicated Pallas sliding-window kernel (overlapping pl.ds
    # reads) for large OW > 1 workloads; XLA's conv already avoids the OW-times
    # im2col materialisation and the module's canonical layout never hits this.
    x = x.astype(jnp.float32)
    y = jax.lax.conv_general_dilated(
        x, weight.astype(jnp.float32),
        window_strides=(1, 1), padding="VALID",
        dimension_numbers=("NCHW", "OIHW", "NCHW"),
        precision=jax.lax.Precision.HIGHEST)
    y = y + bias.astype(jnp.float32).reshape(1, 1, 1, 1)
    return jnp.maximum(y, 0.0).reshape(x.shape[0], -1)


@partial(jax.jit, static_argnames=("min_pallas_rows",))
def actor_forward(x, weight, bias, *, min_pallas_rows=4096):
    """x: [B, 1, H, W] NCHW, weight: [1, 1, 1, F], bias: [1] -> [B, H*OW]."""
    B, C, H, W = x.shape
    assert C == 1
    F_dim = weight.shape[-1]
    OW = W - F_dim + 1
    M = B * H * OW

    if OW != 1 or (_LANES % F_dim) != 0 or M < min_pallas_rows:
        # Tiny batches: one fused XLA op beats pallas_call launch overhead.
        return _xla_forward(x, weight, bias)

    xm = x.astype(jnp.float32).reshape(B * H, W)     # C == 1, W == F: free view
    logits = _actor_forward_pallas(xm, weight, bias)
    return logits.reshape(B, H)


def _reference_forward(x, weight, bias):
    """Pure-JAX reference (conv2d 1xF + ReLU + flatten), independent of the kernel."""
    B, _, H, W = x.shape
    F_dim = weight.shape[-1]
    OW = W - F_dim + 1
    x2 = x[:, 0].astype(jnp.float32)
    windows = jnp.stack([x2[:, :, i:i + F_dim] for i in range(OW)], axis=2)  # [B,H,OW,F]
    y = jnp.einsum("bhof,f->bho", windows,
                   weight.reshape(F_dim).astype(jnp.float32),
                   precision=jax.lax.Precision.HIGHEST) + bias[0]
    return jnp.maximum(y, 0.0).reshape(B, H * OW)


if __name__ == "__main__":
    key = jax.random.PRNGKey(0)
    kx1, kx2, kx3, kw, kb = jax.random.split(key, 5)

    feature_dim = 8
    fan_in = feature_dim  # Conv2d default init bound: 1/sqrt(in_ch * kh * kw)
    bound = 1.0 / (fan_in ** 0.5)
    weight = jax.random.uniform(kw, (1, 1, 1, feature_dim), jnp.float32, -bound, bound)
    bias = jax.random.uniform(kb, (1,), jnp.float32, -bound, bound)

    # Case 1: canonical layout (W == feature_dim), small shapes; force the
    # Pallas path (single block: R = B*H*F/128 = 8 packed rows).
    B1, H1 = 2, 64
    x1 = jax.random.normal(kx1, (B1, 1, H1, feature_dim), jnp.float32)
    out1 = jax.block_until_ready(actor_forward(x1, weight, bias, min_pallas_rows=0))
    ref1 = _reference_forward(x1, weight, bias)
    assert out1.shape == (B1, H1)
    assert jnp.allclose(out1, ref1, atol=1e-4, rtol=1e-4)

    # Case 2: W > feature_dim (OW > 1) -> fused XLA conv fallback (no im2col blowup).
    W2 = feature_dim + 3
    x2 = jax.random.normal(kx2, (B1, 1, H1, W2), jnp.float32)
    out2 = jax.block_until_ready(actor_forward(x2, weight, bias))
    ref2 = _reference_forward(x2, weight, bias)
    assert out2.shape == (B1, H1 * (W2 - feature_dim + 1))
    assert jnp.allclose(out2, ref2, atol=1e-4, rtol=1e-4)

    # Case 3: larger canonical problem through the default threshold: exercises
    # the multi-block path (R = 2048 -> two 1024-row "parallel" grid steps).
    B3, H3 = 32, 1024
    x3 = jax.random.normal(kx3, (B3, 1, H3, feature_dim), jnp.float32)
    out3 = jax.block_until_ready(actor_forward(x3, weight, bias))
    ref3 = _reference_forward(x3, weight, bias)
    assert out3.shape == (B3, H3)
    assert jnp.allclose(out3, ref3, atol=1e-4, rtol=1e-4)

    print("KERNEL_OK")
</pallas_src>

<mosaic_0001>
module attributes {stable_mosaic.version = 11 : i64} {
  func.func @_actor_kernel(%arg0: i32, %arg1: memref<8x128xf32, #tpu.memory_space<vmem>>, %arg2: memref<128x16xf32, #tpu.memory_space<vmem>>, %arg3: memref<1x1xf32, #tpu.memory_space<smem>>, %arg4: memref<8x16xf32, #tpu.memory_space<vmem>>) attributes {dimension_semantics = [#tpu.dimension_semantics<parallel>], iteration_bounds = array<i64: 1>, scalar_prefetch = 0 : i64, scratch_operands = 0 : i64, tpu.core_type = #tpu.core_type<tc>, window_params = [{transform_indices = @transform_0, window_bounds = array<i64: 8, 128>}, {pipeline_mode = #tpu.pipeline_mode<synchronous>, transform_indices = @transform_1, window_bounds = array<i64: 128, 16>}, {transform_indices = @transform_2, window_bounds = array<i64: 1, 1>}, {transform_indices = @transform_3, window_bounds = array<i64: 8, 16>}]} {
    %c0 = arith.constant 0 : index
    %c0_0 = arith.constant 0 : index
    %0 = vector.load %arg1[%c0, %c0_0] : memref<8x128xf32, #tpu.memory_space<vmem>>, vector<8x128xf32>
    %c0_1 = arith.constant 0 : index
    %c0_2 = arith.constant 0 : index
    %1 = vector.load %arg2[%c0_1, %c0_2] : memref<128x16xf32, #tpu.memory_space<vmem>>, vector<128x16xf32>
    %cst = arith.constant dense<0.000000e+00> : vector<8x16xf32>
    %2 = tpu.matmul %0, %1, %cst {dimension_numbers = #tpu.dot_dimension_numbers<[1], [0], [0], [1], [0, 0, 1, 1], [], []>, precision = #tpu.contract_precision<fp32>} : vector<8x128xf32>, vector<128x16xf32>, vector<8x16xf32> -> vector<8x16xf32>
    %c0_3 = arith.constant 0 : index
    %c0_4 = arith.constant 0 : index
    %3 = memref.load %arg3[%c0_3, %c0_4] : memref<1x1xf32, #tpu.memory_space<smem>>
    %4 = vector.broadcast %3 : f32 to vector<8x16xf32>
    %5 = arith.addf %2, %4 : vector<8x16xf32>
    %cst_5 = arith.constant 0.000000e+00 : f32
    %6 = vector.broadcast %cst_5 : f32 to vector<8x16xf32>
    %7 = arith.maximumf %5, %6 : vector<8x16xf32>
    %c0_6 = arith.constant 0 : index
    %c0_7 = arith.constant 0 : index
    %8 = vector.load %arg4[%c0_6, %c0_7] : memref<8x16xf32, #tpu.memory_space<vmem>>, vector<8x16xf32>
    tpu.vector_store %arg4[%c0_6, %c0_7], %7 {strides = array<i32>} : memref<8x16xf32, #tpu.memory_space<vmem>>, vector<8x16xf32>,
    return
  }
  func.func @transform_0(%arg0: i32) -> (i32, i32) {
    %c0_i32 = arith.constant 0 : i32
    %c0_i32_0 = arith.constant 0 : i32
    return %arg0, %c0_i32 : i32, i32
  }
  func.func @transform_1(%arg0: i32) -> (i32, i32) {
    %c0_i32 = arith.constant 0 : i32
    %c0_i32_0 = arith.constant 0 : i32
    %c0_i32_1 = arith.constant 0 : i32
    return %c0_i32, %c0_i32_0 : i32, i32
  }
  func.func @transform_2(%arg0: i32) -> (i32, i32) {
    %c0_i32 = arith.constant 0 : i32
    %c0_i32_0 = arith.constant 0 : i32
    %c0_i32_1 = arith.constant 0 : i32
    return %c0_i32, %c0_i32_0 : i32, i32
  }
  func.func @transform_3(%arg0: i32) -> (i32, i32) {
    %c0_i32 = arith.constant 0 : i32
    %c0_i32_0 = arith.constant 0 : i32
    return %arg0, %c0_i32 : i32, i32
  }
}

</mosaic_0001>

<bundles_post_ra>
// kernel: actor_forward.1
= control target key start
LH: loop header
LB: loop body
LE: loop exit
PB: predicated region body
PF: predicated region fallthrough
CT: control target
= control target key end

     0   :  { %vm376_vm0 = vcmask 130048   ;;  %s697_s1 = inlined_call_operand.vmem [shape: f32[128,16], index: 1, kind: input, shape index: {}]   ;;  %s698_s0 = inlined_call_operand.vmem [shape: f32[8,128], index: 0, kind: input, shape index: {}]   ;;  %s699_s2 = inlined_call_operand.<no memory space> [shape: f32[1,1], index: 2, kind: input, shape index: {}]   ;;  %s700_s3 = inlined_call_operand.vmem [shape: f32[8,16], index: 3, kind: output, shape index: {}]  }
   0x1   :  { %v31_v0 = vld [vmem:[%s697_s1 + $0x78] sm:$0xff]  ;;  %v30_v1 = vld [vmem:[%s697_s1 + $0x70] sm:$0xff]  ;;  %v29_v2 = vld [vmem:[%s697_s1 + $0x68] sm:$0xff] }
   0x2   :  { %v411_v3 = vand.u32 4294901760, %v31_v0  ;;  %v413_v4 = vand.u32 4294901760, %v30_v1  ;;  %v415_v5 = vand.u32 4294901760, %v29_v2  ;;  %v28_v6 = vld [vmem:[%s697_s1 + $0x60] sm:$0xff]  ;;  %v27_v7 = vld [vmem:[%s697_s1 + $0x58] sm:$0xff]  ;;  %v26_v8 = vld [vmem:[%s697_s1 + $0x50] sm:$0xff] }
   0x3   :  { %v426_v9 = vand.u32 4294901760, %v28_v6  ;;  %v428_v10 = vand.u32 4294901760, %v27_v7  ;;  %v430_v11 = vand.u32 4294901760, %v26_v8  ;;  %v25_v12 = vld [vmem:[%s697_s1 + $0x48] sm:$0xff]  ;;  %v24_v13 = vld [vmem:[%s697_s1 + $0x40] sm:$0xff]  ;;  %v23_v21 = vld [vmem:[%s697_s1 + $0x38] sm:$0xff] }
   0x4   :  { %35 = vmatpush.msra.mxu0 %v411_v3  ;;  %v440_v14 = vsub.f32 %v31_v0, %v411_v3  ;;  %v443_v15 = vsub.f32 %v30_v1, %v413_v4  ;;  %v446_v16 = vsub.f32 %v29_v2, %v415_v5  ;;  %v448_v17 = vand.u32 4294901760, %v25_v12  ;;  %231 = vmatpush.msra.mxu3 %v411_v3  ;;  %v22_v34 = vld [vmem:[%s697_s1 + $0x30] sm:$0xff]  ;;  %v21_v35 = vld [vmem:[%s697_s1 + $0x28] sm:$0xff]  ;;  %v20_v42 = vld [vmem:[%s697_s1 + $0x20] sm:$0xff] }
   0x5   :  { %v452_v18 = vsub.f32 %v28_v6, %v426_v9  ;;  %v455_v19 = vsub.f32 %v27_v7, %v428_v10  ;;  %v457_v20 = vand.u32 4294901760, %v24_v13  ;;  %v467_v25 = vsub.f32 %v26_v8, %v430_v11  ;;  %v19_v47 = vld [vmem:[%s697_s1 + $0x18] sm:$0xff]  ;;  %v18_v53 = vld [vmem:[%s697_s1 + $0x10] sm:$0xff]  ;;  %v17_v61 = vld [vmem:[%s697_s1 + $0x8] sm:$0xff] }
   0x6   :  { %37 = vmatpush.msra.mxu0 %v413_v4  ;;  %v77_v22 = vand.u32 4294901760, %v440_v14  ;;  %v83_v23 = vand.u32 4294901760, %v443_v15  ;;  %v89_v24 = vand.u32 4294901760, %v446_v16  ;;  %178 = vmatpush.msra.mxu2 %v440_v14  ;;  %v473_v28 = vsub.f32 %v25_v12, %v448_v17  ;;  %v16_v2 = vld [vmem:[%s697_s1] sm:$0xff] }
   0x7   :  { %v95_v26 = vand.u32 4294901760, %v452_v18  ;;  %v101_v27 = vand.u32 4294901760, %v455_v19  ;;  %233 = vmatpush.msra.mxu3 %v413_v4  ;;  %v486_v32 = vand.u32 4294901760, %v23_v21  ;;  %v490_v33 = vsub.f32 %v24_v13, %v457_v20 }
   0x8   :  { %v78_v29 = vsub.f32 %v440_v14, %v77_v22  ;;  %39 = vmatpush.msra.mxu0 %v415_v5  ;;  %v84_v30 = vsub.f32 %v443_v15, %v83_v23  ;;  %v90_v31 = vsub.f32 %v446_v16, %v89_v24  ;;  %181 = vmatpush.msra.mxu2 %v443_v15  ;;  %v107_v39 = vand.u32 4294901760, %v467_v25 }
   0x9   :  { %235 = vmatpush.msra.mxu3 %v415_v5  ;;  %v96_v38 = vsub.f32 %v452_v18, %v95_v26  ;;  %v102_v40 = vsub.f32 %v455_v19, %v101_v27  ;;  %v113_v41 = vand.u32 4294901760, %v473_v28  ;;  %v514_v44 = vand.u32 4294901760, %v22_v34 }
   0xa   :  { %v79_v36 = vand.u32 4294901760, %v78_v29  ;;  %v85_v37 = vand.u32 4294901760, %v84_v30  ;;  %41 = vmatpush.msra.mxu0 %v426_v9  ;;  %184 = vmatpush.msra.mxu2 %v446_v16  ;;  %v91_v43 = vand.u32 4294901760, %v90_v31  ;;  %v517_v45 = vsub.f32 %v23_v21, %v486_v32  ;;  %v15_v29 = vld [vmem:[%s698_s0] sm:$0xff] }
   0xb   :  { %237 = vmatpush.msra.mxu3 %v426_v9  ;;  %v519_v46 = vand.u32 4294901760, %v21_v35  ;;  %v119_v48 = vand.u32 4294901760, %v490_v33  ;;  %v97_v49 = vand.u32 4294901760, %v96_v38  ;;  %v108_v50 = vsub.f32 %v467_v25, %v107_v39 }
   0xc   :  { %80 = vmatpush.msra.mxu1 %v79_v36  ;;  %43 = vmatpush.msra.mxu0 %v428_v10  ;;  %v532_v51 = vsub.f32 %v22_v34, %v514_v44  ;;  %v534_v52 = vand.u32 4294901760, %v20_v42  ;;  %v539_v54 = vand.u32 4294901760, %v19_v47  ;;  %v103_v55 = vand.u32 4294901760, %v102_v40 }
   0xd   :  { %187 = vmatpush.msra.mxu2 %v452_v18  ;;  %239 = vmatpush.msra.mxu3 %v428_v10  ;;  %v114_v56 = vsub.f32 %v473_v28, %v113_v41  ;;  %v125_v57 = vand.u32 4294901760, %v517_v45  ;;  %v549_v58 = vsub.f32 %v21_v35, %v519_v46  ;;  %v120_v59 = vsub.f32 %v490_v33, %v119_v48 }
   0xe   :  { %86 = vmatpush.msra.mxu1 %v85_v37  ;;  %45 = vmatpush.msra.mxu0 %v430_v11  ;;  %v554_v60 = vand.u32 4294901760, %v18_v53  ;;  %v109_v62 = vand.u32 4294901760, %v108_v50  ;;  %v131_v63 = vand.u32 4294901760, %v532_v51  ;;  %v564_v0 = vsub.f32 %v20_v42, %v534_v52 }
   0xf   :  { %190 = vmatpush.msra.mxu2 %v455_v19  ;;  %241 = vmatpush.msra.mxu3 %v430_v11  ;;  %v567_v1 = vsub.f32 %v19_v47, %v539_v54  ;;  %v115_v6 = vand.u32 4294901760, %v114_v56  ;;  %v126_v7 = vsub.f32 %v517_v45, %v125_v57  ;;  %v137_v8 = vand.u32 4294901760, %v549_v58 }
  0x10   :  { %92 = vmatpush.msra.mxu1 %v91_v43  ;;  %47 = vmatpush.msra.mxu0 %v448_v17  ;;  %v579_v12 = vand.u32 4294901760, %v17_v61  ;;  %v121_v13 = vand.u32 4294901760, %v120_v59  ;;  %v582_v21 = vsub.f32 %v18_v53, %v554_v60  ;;  %v132_v30 = vsub.f32 %v532_v51, %v131_v63 }
  0x11   :  { %193 = vmatpush.msra.mxu2 %v467_v25  ;;  %243 = vmatpush.msra.mxu3 %v448_v17  ;;  %v143_v31 = vand.u32 4294901760, %v564_v0  ;;  %v594_v34 = vand.u32 4294901760, %v16_v2  ;;  %v596_v35 = vand.u32 4294901760, %v15_v29  ;;  %v149_v36 = vand.u32 4294901760, %v567_v1 }
  0x12   :  { %98 = vmatpush.msra.mxu1 %v97_v49  ;;  %49 = vmatpush.msra.mxu0 %v457_v20  ;;  %v127_v37 = vand.u32 4294901760, %v126_v7  ;;  %v138_v38 = vsub.f32 %v549_v58, %v137_v8  ;;  %v606_v40 = vsub.f32 %v17_v61, %v579_v12  ;;  %v133_v43 = vand.u32 4294901760, %v132_v30 }
  0x13   :  { %196 = vmatpush.msra.mxu2 %v473_v28  ;;  %245 = vmatpush.msra.mxu3 %v457_v20  ;;  %v67_v42 = vsub.f32 %v15_v29, %v596_v35  ;;  %v144_v47 = vsub.f32 %v564_v0, %v143_v31  ;;  %v155_v49 = vand.u32 4294901760, %v582_v21  ;;  %v617_v50 = vsub.f32 %v16_v2, %v594_v34 }
  0x14   :  { %104 = vmatpush.msra.mxu1 %v103_v55  ;;  %51 = vmatpush.msra.mxu0 %v486_v32  ;;  %v139_v53 = vand.u32 4294901760, %v138_v38  ;;  %v150_v55 = vsub.f32 %v567_v1, %v149_v36  ;;  %v161_v56 = vand.u32 4294901760, %v606_v40 }
  0x15   :  { %199 = vmatpush.msra.mxu2 %v490_v33  ;;  %247 = vmatpush.msra.mxu3 %v486_v32  ;;  %v68_v59 = vand.u32 4294901760, %v67_v42  ;;  %v145_v61 = vand.u32 4294901760, %v144_v47  ;;  %v167_v2 = vand.u32 4294901760, %v617_v50 }
  0x16   :  { %110 = vmatpush.msra.mxu1 %v109_v62  ;;  %53 = vmatpush.msra.mxu0 %v514_v44  ;;  %v156_v62 = vsub.f32 %v582_v21, %v155_v49  ;;  %v162_v7 = vsub.f32 %v606_v40, %v161_v56 }
  0x17   :  { %202 = vmatpush.msra.mxu2 %v517_v45  ;;  %249 = vmatpush.msra.mxu3 %v514_v44  ;;  %v168_v30 = vsub.f32 %v617_v50, %v167_v2 }
  0x18   :  { %116 = vmatpush.msra.mxu1 %v115_v6  ;;  %55 = vmatpush.msra.mxu0 %v519_v46  ;;  %v151_v6 = vand.u32 4294901760, %v150_v55  ;;  %v157_v29 = vand.u32 4294901760, %v156_v62 }
  0x19   :  { %205 = vmatpush.msra.mxu2 %v532_v51  ;;  %251 = vmatpush.msra.mxu3 %v519_v46 }
  0x1a   :  { %122 = vmatpush.msra.mxu1 %v121_v13  ;;  %57 = vmatpush.msra.mxu0 %v534_v52  ;;  %v69_v13 = vsub.f32 %v67_v42, %v68_v59 }
  0x1b   :  { %208 = vmatpush.msra.mxu2 %v549_v58  ;;  %253 = vmatpush.msra.mxu3 %v534_v52 }
  0x1c   :  { %128 = vmatpush.msra.mxu1 %v127_v37  ;;  %59 = vmatpush.msra.mxu0 %v539_v54  ;;  %v163_v37 = vand.u32 4294901760, %v162_v7  ;;  %v70_v38 = vand.u32 4294901760, %v69_v13 }
  0x1d   :  { %211 = vmatpush.msra.mxu2 %v564_v0  ;;  %255 = vmatpush.msra.mxu3 %v539_v54 }
  0x1e   :  { %134 = vmatpush.msra.mxu1 %v133_v43  ;;  %61 = vmatpush.msra.mxu0 %v554_v60  ;;  %v169_v43 = vand.u32 4294901760, %v168_v30 }
  0x1f   :  { %214 = vmatpush.msra.mxu2 %v567_v1  ;;  %257 = vmatpush.msra.mxu3 %v554_v60 }
  0x20   :  { %140 = vmatpush.msra.mxu1 %v139_v53  ;;  %63 = vmatpush.msra.mxu0 %v579_v12 }
  0x21   :  { %217 = vmatpush.msra.mxu2 %v582_v21  ;;  %259 = vmatpush.msra.mxu3 %v579_v12 }
  0x22   :  { %146 = vmatpush.msra.mxu1 %v145_v61  ;;  %65 = vmatpush.msra.mxu0 %v594_v34 }
  0x23   :  { %220 = vmatpush.msra.mxu2 %v606_v40  ;;  %261 = vmatpush.msra.mxu3 %v594_v34 }
  0x24   :  { %272 = vmatpush.msrb.mxu0 %v77_v22  ;;  %152 = vmatpush.msra.mxu1 %v151_v6 }
  0x25   :  { %223 = vmatpush.msra.mxu2 %v617_v50  ;;  %265 = vmatmul.f32.vlgmr.msra.gmra.mxu3 %v68_v59 }
  0x26   :  { %276 = vmatpush.msrb.mxu0 %v83_v23  ;;  %158 = vmatpush.msra.mxu1 %v157_v29 }
  0x27   :  { %226 = vmatmul.f32.vlgmr.msra.gmra.mxu2 %v67_v42  ;;  %71 = vmatmul.f32.vlgmr.msra.gmra.mxu0 %v70_v38 }
  0x28   :  { %280 = vmatpush.msrb.mxu0 %v89_v24  ;;  %164 = vmatpush.msra.mxu1 %v163_v37 }
  0x2a   :  { %284 = vmatpush.msrb.mxu0 %v95_v26  ;;  %170 = vmatpush.msra.mxu1 %v169_v43 }
  0x2b   :  { %172 = vmatmul.f32.vlgmr.msra.gmra.mxu1 %v596_v35 }
  0x2c   :  { %339 = vmatpush.msrb.mxu1 %v411_v3  ;;  %288 = vmatpush.msrb.mxu0 %v101_v27  ;;  %v33_v3 = vstv %s699_s2 }
  0x2e   :  { %341 = vmatpush.msrb.mxu1 %v413_v4  ;;  %292 = vmatpush.msrb.mxu0 %v107_v39 }
  0x30   :  { %343 = vmatpush.msrb.mxu1 %v415_v5  ;;  %296 = vmatpush.msrb.mxu0 %v113_v41 }
  0x32   :  { %345 = vmatpush.msrb.mxu1 %v426_v9  ;;  %300 = vmatpush.msrb.mxu0 %v119_v48 }
  0x34   :  { %347 = vmatpush.msrb.mxu1 %v428_v10  ;;  %304 = vmatpush.msrb.mxu0 %v125_v57 }
  0x36   :  { %349 = vmatpush.msrb.mxu1 %v430_v11  ;;  %308 = vmatpush.msrb.mxu0 %v131_v63 }
  0x38   :  { %351 = vmatpush.msrb.mxu1 %v448_v17  ;;  %312 = vmatpush.msrb.mxu0 %v137_v8 }
  0x3a   :  { %353 = vmatpush.msrb.mxu1 %v457_v20  ;;  %316 = vmatpush.msrb.mxu0 %v143_v31 }
  0x3c   :  { %355 = vmatpush.msrb.mxu1 %v486_v32  ;;  %320 = vmatpush.msrb.mxu0 %v149_v36 }
  0x3e   :  { %357 = vmatpush.msrb.mxu1 %v514_v44  ;;  %324 = vmatpush.msrb.mxu0 %v155_v49 }
  0x40   :  { %359 = vmatpush.msrb.mxu1 %v519_v46  ;;  %328 = vmatpush.msrb.mxu0 %v161_v56 }
  0x42   :  { %361 = vmatpush.msrb.mxu1 %v534_v52  ;;  %332 = vmatpush.msrb.mxu0 %v167_v2 }
  0x43   :  { %334 = vmatmul.f32.vlgmr.msrb.gmra.mxu0 %v596_v35 }
  0x44   :  { %363 = vmatpush.msrb.mxu1 %v539_v54 }
  0x46   :  { %365 = vmatpush.msrb.mxu1 %v554_v60 }
  0x48   :  { %367 = vmatpush.msrb.mxu1 %v579_v12 }
  0x4a   :  { %369 = vmatpush.msrb.mxu1 %v594_v34 }
  0x4b   :  { %371 = vmatmul.f32.vlgmr.msrb.gmra.mxu1 %v596_v35 }
  0xa4   :  { %v72_v4 = vpop.f32.mrf.mxu0 }
  0xa5   :  { %v73_v5 = vadd.f32 %v72_v4, %v33_v3 }
  0xa8   :  { %v173_v9 = vpop.f32.mrf.mxu1  ;;  %v266_v15 = vpop.f32.mrf.mxu3 }
  0xa9   :  { %v174_v10 = vadd.f32 %v173_v9, %v73_v5 }
  0xaa   :  { %v227_v11 = vpop.f32.mrf.mxu2 }
  0xab   :  { %v228_v14 = vadd.f32 %v227_v11, %v174_v10 }
  0xad   :  { %v267_v16 = vadd.f32 %v266_v15, %v228_v14 }
  0xc0   :  { %v335_v17 = vpop.f32.mrf.mxu0 }
  0xc1   :  { %v336_v18 = vadd.f32 %v335_v17, %v267_v16 }
  0xc8   :  { %v372_v19 = vpop.f32.mrf.mxu1 }
  0xc9   :  { %v373_v20 = vadd.f32 %v372_v19, %v336_v18 }
  0xcb   :  { %v375_v22 = vmax.f32 %v373_v20, 0.0 }
  0xcd   :  { %377 = vst.msk [vmem:[%s700_s3] sm:$0xff] %vm376_vm0, %v375_v22 }

</bundles_post_ra>
